<compile_context>
chip_gen: v7x
topology: tpu7x:2x2x1
jax: 0.10.0
libtpu: 0.0.40
codegen_flags: <defaults>
</compile_context>

<pallas_src>
import jax
import jax.numpy as jnp
from jax.experimental import pallas as pl
from jax.experimental.pallas import tpu as pltpu

HIDDEN = 32


def rnn_kernel(x_ref, wblock_ref, rows_ref, out_ref):
    """x_ref: (B, T) input sequence (input_size=1 squeezed away).

    wblock_ref: (2H, 2H) block matrix for the packed state [h1, h2_prev]:
                  [[Whh1^T, Wih2^T],
                   [0,      Whh2^T]]
    rows_ref:   (5, H) row slab:
                  row 0: W_ih_l0 as a row (layer-1 input weight)
                  row 1: b1 = b_ih_l0 + b_hh_l0
                  row 2: b2 = b_ih_l1 + b_hh_l1
                  row 3: fc.weight as a row
                  row 4: [fc.bias, 0, 0, ...]
    out_ref:    (B, 1)
    """
    f32 = jnp.float32
    B, T = x_ref.shape
    H = rows_ref.shape[1]

    # Load everything once; all weights stay resident in vregs.
    x = x_ref[...]              # (B, T)
    w_block = wblock_ref[...]   # (2H, 2H)
    rows = rows_ref[...]        # (5, H)
    wih1 = rows[0:1, :]         # (1, H)
    b1 = rows[1:2, :]           # (1, H)
    b2 = rows[2:3, :]           # (1, H)
    wfc = rows[3:4, :]          # (1, H)
    bfc = rows[4:5, 0:1]        # (1, 1)

    # Hoisted layer-1 input projections for every timestep (pure VPU broadcast,
    # fully off the serial recurrence chain):  u1_all[:, t, :] = x[:, t] * wih1 + b1
    u1_all = x[:, :, None] * wih1[None, :, :] + b1[None, :, :]            # (B, T, H)

    # Packed per-wave additive term: left half feeds layer-1 (u1[t]), right half
    # feeds layer-2 (b2).  Built once so the loop body is just dot -> add -> tanh.
    b2_all = jnp.zeros((B, T, H), f32) + b2[None, :, :]                    # (B, T, H)
    add_all = jnp.concatenate([u1_all, b2_all], axis=-1)                   # (B, T, 2H)

    # ---- Wavefront over the two stacked recurrences. ----
    # Wave step 0: h1[0] = tanh(u1[0]) (initial hidden states are zero);
    # the layer-2 half of the packed state starts at h2[-1] = 0.
    P = jnp.concatenate([jnp.tanh(u1_all[:, 0, :]),
                         jnp.zeros((B, H), f32)], axis=-1)                 # (B, 2H)

    # Wave steps 1..T-1: one MXU dot + one tanh each produce (h1[w], h2[w-1]).
    # T is a compile-time constant; only the packed carry is live across steps.
    for w in range(1, T):
        P = jnp.tanh(add_all[:, w, :] +
                     jnp.dot(P, w_block, preferred_element_type=f32))

    # Wave step T: only h2[T-1] is still missing; the left half of the dot is unused.
    comb = jnp.dot(P, w_block, preferred_element_type=f32)
    h2_last = jnp.tanh(comb[:, H:] + b2)                                   # (B, H)

    # Final fc on the last timestep: VPU multiply + lane reduce (skip the MXU).
    out_ref[...] = jnp.sum(h2_last * wfc, axis=-1, keepdims=True) + bfc


def net_forward(x, params):
    """x: (B, T, 1) float32 -> (B, 1) float32, same semantics as the PyTorch Net."""
    B, T, I = x.shape
    assert I == 1
    x2 = x[..., 0].astype(jnp.float32)  # (B, T)

    vmem = pl.BlockSpec(memory_space=pltpu.MemorySpace.VMEM)
    # TODO(synk): for large B on v7x (2 TensorCores), add a batch-block grid
    # (block a multiple of 8 rows) with dimension_semantics=("parallel",).
    # Stays gridless here: v5e/v6e are single-TC and grid steps (~0.35us each)
    # are pure loss on this latency-bound, microsecond-scale kernel.
    return pl.pallas_call(
        rnn_kernel,
        out_shape=jax.ShapeDtypeStruct((B, 1), jnp.float32),
        in_specs=[vmem, vmem, vmem],
        out_specs=vmem,
    )(x2, params["w_block"], params["rows"])


def init_params(key, hidden=HIDDEN):
    """Deterministic init mimicking PyTorch shapes:
       W_ih_l0 (H,1), W_hh_l0 (H,H), b_ih_l0 (H,), b_hh_l0 (H,)
       W_ih_l1 (H,H), W_hh_l1 (H,H), b_ih_l1 (H,), b_hh_l1 (H,)
       fc.weight (1,H), fc.bias (1,)
    Packs them into the two lane-dense slabs the kernel consumes, and keeps the
    individual transposed matrices around for the pure-JAX reference."""
    ks = jax.random.split(key, 10)
    bound = 1.0 / jnp.sqrt(hidden)
    u = lambda k, shape: jax.random.uniform(k, shape, jnp.float32, -bound, bound)

    w_ih_l0 = u(ks[0], (hidden, 1))
    w_hh_l0 = u(ks[1], (hidden, hidden))
    b_ih_l0 = u(ks[2], (hidden,))
    b_hh_l0 = u(ks[3], (hidden,))
    w_ih_l1 = u(ks[4], (hidden, hidden))
    w_hh_l1 = u(ks[5], (hidden, hidden))
    b_ih_l1 = u(ks[6], (hidden,))
    b_hh_l1 = u(ks[7], (hidden,))
    w_fc = u(ks[8], (1, hidden))
    b_fc = u(ks[9], (1,))

    # Block weight for the packed wavefront state [h1, h2_prev]:
    #   [h1, h2p] @ [[Whh1^T, Wih2^T], [0, Whh2^T]]
    #     = [h1@Whh1^T,  h1@Wih2^T + h2p@Whh2^T]
    top = jnp.concatenate([w_hh_l0.T, w_ih_l1.T], axis=1)                   # (H, 2H)
    bot = jnp.concatenate([jnp.zeros((hidden, hidden), jnp.float32),
                           w_hh_l1.T], axis=1)                              # (H, 2H)
    w_block = jnp.concatenate([top, bot], axis=0)                           # (2H, 2H)

    rows = jnp.stack([
        w_ih_l0[:, 0],                                     # layer-1 input weight row
        b_ih_l0 + b_hh_l0,                                 # combined layer-1 bias
        b_ih_l1 + b_hh_l1,                                 # combined layer-2 bias
        w_fc[0],                                           # fc weight row
        jnp.zeros((hidden,), jnp.float32).at[0].set(b_fc[0]),  # fc bias in lane 0
    ], axis=0)                                             # (5, H)

    return {
        # kernel slabs
        "w_block": w_block,
        "rows": rows,
        # individual transposed weights for the pure-JAX reference
        "wih1_t": w_ih_l0.T,                       # (1, H)
        "whh1_t": w_hh_l0.T,                       # (H, H)
        "b1": (b_ih_l0 + b_hh_l0)[None, :],        # (1, H)
        "wih2_t": w_ih_l1.T,                       # (H, H)
        "whh2_t": w_hh_l1.T,                       # (H, H)
        "b2": (b_ih_l1 + b_hh_l1)[None, :],        # (1, H)
        "wfc_row": w_fc,                           # (1, H)
        "bfc": b_fc[None, :],                      # (1, 1)
    }


def net_forward_ref(x, params):
    """Pure-JAX reference of the PyTorch forward pass."""
    B, T, _ = x.shape
    h1 = jnp.zeros((B, HIDDEN), jnp.float32)
    h2 = jnp.zeros((B, HIDDEN), jnp.float32)
    for t in range(T):
        x_t = x[:, t, :]  # (B, 1)
        h1 = jnp.tanh(x_t @ params["wih1_t"] + h1 @ params["whh1_t"] + params["b1"])
        h2 = jnp.tanh(h1 @ params["wih2_t"] + h2 @ params["whh2_t"] + params["b2"])
    return jnp.sum(h2 * params["wfc_row"], axis=-1, keepdims=True) + params["bfc"]


if __name__ == "__main__":
    key = jax.random.PRNGKey(0)
    k_x, k_p = jax.random.split(key)

    B, T = 2, 8  # batch=2, seq=8, input_size=1 (implied by nn.RNN(input_size=1))
    x = jax.random.normal(k_x, (B, T, 1), jnp.float32)
    params = init_params(k_p)

    out = net_forward(x, params)
    out = jax.block_until_ready(out)

    ref = net_forward_ref(x, params)
    assert out.shape == (B, 1)
    assert jnp.allclose(out, ref, atol=1e-4), (out, ref)

    print("KERNEL_OK")
</pallas_src>

<mosaic_0001>
module attributes {stable_mosaic.version = 11 : i64} {
  func.func @rnn_kernel(%arg0: memref<2x8xf32, #tpu.memory_space<vmem>>, %arg1: memref<64x64xf32, #tpu.memory_space<vmem>>, %arg2: memref<5x32xf32, #tpu.memory_space<vmem>>, %arg3: memref<2x1xf32, #tpu.memory_space<vmem>>) attributes {dimension_semantics = [], scalar_prefetch = 0 : i64, scratch_operands = 0 : i64, tpu.core_type = #tpu.core_type<tc>} {
    %c0 = arith.constant 0 : index
    %c0_0 = arith.constant 0 : index
    %0 = vector.load %arg0[%c0, %c0_0] : memref<2x8xf32, #tpu.memory_space<vmem>>, vector<2x8xf32>
    %c0_1 = arith.constant 0 : index
    %c0_2 = arith.constant 0 : index
    %1 = vector.load %arg1[%c0_1, %c0_2] : memref<64x64xf32, #tpu.memory_space<vmem>>, vector<64x64xf32>
    %c0_3 = arith.constant 0 : index
    %c0_4 = arith.constant 0 : index
    %2 = vector.load %arg2[%c0_3, %c0_4] : memref<5x32xf32, #tpu.memory_space<vmem>>, vector<5x32xf32>
    %3 = vector.extract_strided_slice %2 {offsets = [0, 0], sizes = [1, 32], strides = [1, 1]} : vector<5x32xf32> to vector<1x32xf32>
    %4 = vector.extract_strided_slice %2 {offsets = [1, 0], sizes = [1, 32], strides = [1, 1]} : vector<5x32xf32> to vector<1x32xf32>
    %5 = vector.extract_strided_slice %2 {offsets = [2, 0], sizes = [1, 32], strides = [1, 1]} : vector<5x32xf32> to vector<1x32xf32>
    %6 = vector.extract_strided_slice %2 {offsets = [3, 0], sizes = [1, 32], strides = [1, 1]} : vector<5x32xf32> to vector<1x32xf32>
    %7 = vector.extract_strided_slice %2 {offsets = [4, 0], sizes = [1, 1], strides = [1, 1]} : vector<5x32xf32> to vector<1x1xf32>
    %8 = vector.shape_cast %0 : vector<2x8xf32> to vector<2x8x1xf32>
    %9 = vector.shape_cast %3 : vector<1x32xf32> to vector<1x1x32xf32>
    %10 = vector.broadcast %8 : vector<2x8x1xf32> to vector<2x8x32xf32>
    %11 = vector.broadcast %9 : vector<1x1x32xf32> to vector<2x8x32xf32>
    %12 = arith.mulf %10, %11 : vector<2x8x32xf32>
    %13 = vector.shape_cast %4 : vector<1x32xf32> to vector<1x1x32xf32>
    %14 = vector.broadcast %13 : vector<1x1x32xf32> to vector<2x8x32xf32>
    %15 = arith.addf %12, %14 : vector<2x8x32xf32>
    %cst = arith.constant 0.000000e+00 : f32
    %16 = vector.broadcast %cst : f32 to vector<2x8x32xf32>
    %17 = vector.shape_cast %5 : vector<1x32xf32> to vector<1x1x32xf32>
    %18 = vector.broadcast %17 : vector<1x1x32xf32> to vector<2x8x32xf32>
    %19 = arith.addf %16, %18 : vector<2x8x32xf32>
    %20 = tpu.concatenate %15, %19 in 2 : vector<2x8x32xf32>, vector<2x8x32xf32> -> vector<2x8x64xf32>
    %21 = vector.extract_strided_slice %15 {offsets = [0, 0, 0], sizes = [2, 1, 32], strides = [1, 1, 1]} : vector<2x8x32xf32> to vector<2x1x32xf32>
    %22 = vector.shape_cast %21 : vector<2x1x32xf32> to vector<2x32xf32>
    %23 = math.tanh %22 : vector<2x32xf32>
    %cst_5 = arith.constant 0.000000e+00 : f32
    %24 = vector.broadcast %cst_5 : f32 to vector<2x32xf32>
    %25 = tpu.concatenate %23, %24 in 1 : vector<2x32xf32>, vector<2x32xf32> -> vector<2x64xf32>
    %26 = vector.extract_strided_slice %20 {offsets = [0, 1, 0], sizes = [2, 1, 64], strides = [1, 1, 1]} : vector<2x8x64xf32> to vector<2x1x64xf32>
    %27 = vector.shape_cast %26 : vector<2x1x64xf32> to vector<2x64xf32>
    %cst_6 = arith.constant dense<0.000000e+00> : vector<2x64xf32>
    %28 = tpu.matmul %25, %1, %cst_6 {dimension_numbers = #tpu.dot_dimension_numbers<[1], [0], [0], [1], [0, 0, 1, 1], [], []>} : vector<2x64xf32>, vector<64x64xf32>, vector<2x64xf32> -> vector<2x64xf32>
    %29 = arith.addf %27, %28 : vector<2x64xf32>
    %30 = math.tanh %29 : vector<2x64xf32>
    %31 = vector.extract_strided_slice %20 {offsets = [0, 2, 0], sizes = [2, 1, 64], strides = [1, 1, 1]} : vector<2x8x64xf32> to vector<2x1x64xf32>
    %32 = vector.shape_cast %31 : vector<2x1x64xf32> to vector<2x64xf32>
    %cst_7 = arith.constant dense<0.000000e+00> : vector<2x64xf32>
    %33 = tpu.matmul %30, %1, %cst_7 {dimension_numbers = #tpu.dot_dimension_numbers<[1], [0], [0], [1], [0, 0, 1, 1], [], []>} : vector<2x64xf32>, vector<64x64xf32>, vector<2x64xf32> -> vector<2x64xf32>
    %34 = arith.addf %32, %33 : vector<2x64xf32>
    %35 = math.tanh %34 : vector<2x64xf32>
    %36 = vector.extract_strided_slice %20 {offsets = [0, 3, 0], sizes = [2, 1, 64], strides = [1, 1, 1]} : vector<2x8x64xf32> to vector<2x1x64xf32>
    %37 = vector.shape_cast %36 : vector<2x1x64xf32> to vector<2x64xf32>
    %cst_8 = arith.constant dense<0.000000e+00> : vector<2x64xf32>
    %38 = tpu.matmul %35, %1, %cst_8 {dimension_numbers = #tpu.dot_dimension_numbers<[1], [0], [0], [1], [0, 0, 1, 1], [], []>} : vector<2x64xf32>, vector<64x64xf32>, vector<2x64xf32> -> vector<2x64xf32>
    %39 = arith.addf %37, %38 : vector<2x64xf32>
    %40 = math.tanh %39 : vector<2x64xf32>
    %41 = vector.extract_strided_slice %20 {offsets = [0, 4, 0], sizes = [2, 1, 64], strides = [1, 1, 1]} : vector<2x8x64xf32> to vector<2x1x64xf32>
    %42 = vector.shape_cast %41 : vector<2x1x64xf32> to vector<2x64xf32>
    %cst_9 = arith.constant dense<0.000000e+00> : vector<2x64xf32>
    %43 = tpu.matmul %40, %1, %cst_9 {dimension_numbers = #tpu.dot_dimension_numbers<[1], [0], [0], [1], [0, 0, 1, 1], [], []>} : vector<2x64xf32>, vector<64x64xf32>, vector<2x64xf32> -> vector<2x64xf32>
    %44 = arith.addf %42, %43 : vector<2x64xf32>
    %45 = math.tanh %44 : vector<2x64xf32>
    %46 = vector.extract_strided_slice %20 {offsets = [0, 5, 0], sizes = [2, 1, 64], strides = [1, 1, 1]} : vector<2x8x64xf32> to vector<2x1x64xf32>
    %47 = vector.shape_cast %46 : vector<2x1x64xf32> to vector<2x64xf32>
    %cst_10 = arith.constant dense<0.000000e+00> : vector<2x64xf32>
    %48 = tpu.matmul %45, %1, %cst_10 {dimension_numbers = #tpu.dot_dimension_numbers<[1], [0], [0], [1], [0, 0, 1, 1], [], []>} : vector<2x64xf32>, vector<64x64xf32>, vector<2x64xf32> -> vector<2x64xf32>
    %49 = arith.addf %47, %48 : vector<2x64xf32>
    %50 = math.tanh %49 : vector<2x64xf32>
    %51 = vector.extract_strided_slice %20 {offsets = [0, 6, 0], sizes = [2, 1, 64], strides = [1, 1, 1]} : vector<2x8x64xf32> to vector<2x1x64xf32>
    %52 = vector.shape_cast %51 : vector<2x1x64xf32> to vector<2x64xf32>
    %cst_11 = arith.constant dense<0.000000e+00> : vector<2x64xf32>
    %53 = tpu.matmul %50, %1, %cst_11 {dimension_numbers = #tpu.dot_dimension_numbers<[1], [0], [0], [1], [0, 0, 1, 1], [], []>} : vector<2x64xf32>, vector<64x64xf32>, vector<2x64xf32> -> vector<2x64xf32>
    %54 = arith.addf %52, %53 : vector<2x64xf32>
    %55 = math.tanh %54 : vector<2x64xf32>
    %56 = vector.extract_strided_slice %20 {offsets = [0, 7, 0], sizes = [2, 1, 64], strides = [1, 1, 1]} : vector<2x8x64xf32> to vector<2x1x64xf32>
    %57 = vector.shape_cast %56 : vector<2x1x64xf32> to vector<2x64xf32>
    %cst_12 = arith.constant dense<0.000000e+00> : vector<2x64xf32>
    %58 = tpu.matmul %55, %1, %cst_12 {dimension_numbers = #tpu.dot_dimension_numbers<[1], [0], [0], [1], [0, 0, 1, 1], [], []>} : vector<2x64xf32>, vector<64x64xf32>, vector<2x64xf32> -> vector<2x64xf32>
    %59 = arith.addf %57, %58 : vector<2x64xf32>
    %60 = math.tanh %59 : vector<2x64xf32>
    %cst_13 = arith.constant dense<0.000000e+00> : vector<2x64xf32>
    %61 = tpu.matmul %60, %1, %cst_13 {dimension_numbers = #tpu.dot_dimension_numbers<[1], [0], [0], [1], [0, 0, 1, 1], [], []>} : vector<2x64xf32>, vector<64x64xf32>, vector<2x64xf32> -> vector<2x64xf32>
    %62 = vector.extract_strided_slice %61 {offsets = [0, 32], sizes = [2, 32], strides = [1, 1]} : vector<2x64xf32> to vector<2x32xf32>
    %63 = vector.broadcast %5 : vector<1x32xf32> to vector<2x32xf32>
    %64 = arith.addf %62, %63 : vector<2x32xf32>
    %65 = math.tanh %64 : vector<2x32xf32>
    %66 = vector.broadcast %6 : vector<1x32xf32> to vector<2x32xf32>
    %67 = arith.mulf %65, %66 : vector<2x32xf32>
    %cst_14 = arith.constant dense<0.000000e+00> : vector<2xf32>
    %68 = vector.multi_reduction <add>, %67, %cst_14 [1] : vector<2x32xf32> to vector<2xf32>
    %69 = vector.shape_cast %68 : vector<2xf32> to vector<2x1xf32>
    %70 = vector.broadcast %7 : vector<1x1xf32> to vector<2x1xf32>
    %71 = arith.addf %69, %70 : vector<2x1xf32>
    %c0_15 = arith.constant 0 : index
    %c0_16 = arith.constant 0 : index
    %72 = vector.load %arg3[%c0_15, %c0_16] : memref<2x1xf32, #tpu.memory_space<vmem>>, vector<2x1xf32>
    tpu.vector_store %arg3[%c0_15, %c0_16], %71 {strides = array<i32>} : memref<2x1xf32, #tpu.memory_space<vmem>>, vector<2x1xf32>,
    return
  }
}

</mosaic_0001>

<bundles_post_ra>
// kernel: tpu_custom_call.1
= control target key start
LH: loop header
LB: loop body
LE: loop exit
PB: predicated region body
PF: predicated region fallthrough
CT: control target
= control target key end

     0   :  { %8 = vsyncpa [#allocation3], 0  ;;  %s1471_s0 = inlined_call_operand.hbm [shape: f32[2,8], index: 0, kind: input, shape index: {}]   ;;  %s1472_s1 = inlined_call_operand.hbm [shape: f32[64,64], index: 1, kind: input, shape index: {}]   ;;  %s1473_s2 = inlined_call_operand.hbm [shape: f32[5,32], index: 2, kind: input, shape index: {}]   ;;  %s1474_s3 = inlined_call_operand.vmem [shape: f32[2,1], index: 3, kind: output, shape index: {}]  }
   0x1   :  { %9 = vsyncpa [#allocation5], 0  ;;  %s1260_s12 = smov [#allocation4]   ;;  %s1190_s16 = scalar_lea.hbm %s1472_s1, 1024 }
   0x2   :  { %s25_s13 = sshll.u32 %s1260_s12, 4  ;;  %p1191_p0 = scmp.ne.s32.totalorder %s1472_s1, %s1190_s16  ;;  %s26_s13 = int_to_ptr.vmem [resolvable:$true] %s25_s13 }
   0x3   :  { %p1194_p1 = scmp.lt.u32.totalorder %s1190_s16, %s1472_s1 }
   0x5   :  { %p1196_p2 = pnand %p1194_p1, %p1191_p0 }
   0x7   :  { %1199 = shalt.err (!%p1196_p2)
}
   0x8   :  { %s1200_s21 = scalar_lea.vmem %s26_s13, 1024  ;;  %p1205_p4 = scmp.lt.s32.totalorder %s26_s13, %s26_s13 }
   0x9   :  { %p1201_p3 = scmp.ne.s32.totalorder %s26_s13, %s1200_s21  ;;  %p1206_p5 = scmp.lt.s32.totalorder %s1200_s21, %s1200_s21 }
   0xb   :  { %p1207_p6 = por %p1206_p5, %p1205_p4 }
   0xd   :  { %p1208_p7 = pnand %p1207_p6, %p1201_p3 }
   0xf   :  { %1211 = shalt.err (!%p1208_p7)
}
  0x10   :  { %s1261_s22 = smov 128   ;;  %s1262_s23 = smov 8  }
  0x11   :  { %31 = dma.hbm_to_vmem [thread:$0]  %s1472_s1, 1024, %s26_s13, [#allocation5], %s1261_s22, %s1261_s22, %s1262_s23  }
  0x12   :  { %s1263_s26 = smov [#allocation2]   ;;  %s1264_s28 = smov [#allocation6]  }
  0x13   :  { %s16_s27 = sshll.u32 %s1263_s26, 4  ;;  %s38_s29 = sshll.u32 %s1264_s28, 4  ;;  %s17_s27 = int_to_ptr.vmem [resolvable:$true] %s16_s27  ;;  %s39_s29 = int_to_ptr.vmem [resolvable:$true] %s38_s29 }
  0x14   :  { %s1212_s5 = scalar_lea.hbm %s1471_s0, 32 }
  0x15   :  { %p1213_p8 = scmp.ne.s32.totalorder %s1471_s0, %s1212_s5  ;;  %p1216_p9 = scmp.lt.u32.totalorder %s1212_s5, %s1471_s0 }
  0x17   :  { %p1218_p10 = pnand %p1216_p9, %p1213_p8 }
  0x19   :  { %1221 = shalt.err (!%p1218_p10)
}
  0x1a   :  { %s1222_s1 = scalar_lea.vmem %s17_s27, 32  ;;  %p1227_p12 = scmp.lt.s32.totalorder %s17_s27, %s17_s27 }
  0x1b   :  { %p1223_p11 = scmp.ne.s32.totalorder %s17_s27, %s1222_s1  ;;  %p1228_p13 = scmp.lt.s32.totalorder %s1222_s1, %s1222_s1 }
  0x1d   :  { %p1229_p0 = por %p1228_p13, %p1227_p12 }
  0x1f   :  { %p1230_p1 = pnand %p1229_p0, %p1223_p11 }
  0x21   :  { %1233 = shalt.err (!%p1230_p1)
}
  0x22   :  { %19 = dma.hbm_to_vmem [thread:$0]  %s1471_s0, 32, %s17_s27, [#allocation3]  }
  0x23   :  { %s1234_s14 = scalar_lea.hbm %s1473_s2, 128 }
  0x24   :  { %p1235_p2 = scmp.ne.s32.totalorder %s1473_s2, %s1234_s14  ;;  %p1238_p3 = scmp.lt.u32.totalorder %s1234_s14, %s1473_s2 }
  0x26   :  { %p1240_p4 = pnand %p1238_p3, %p1235_p2 }
  0x28   :  { %1243 = shalt.err (!%p1240_p4)
}
  0x29   :  { %s1244_s19 = scalar_lea.vmem %s39_s29, 128  ;;  %p1249_p6 = scmp.lt.s32.totalorder %s39_s29, %s39_s29 }
  0x2a   :  { %p1245_p5 = scmp.ne.s32.totalorder %s39_s29, %s1244_s19  ;;  %p1250_p7 = scmp.lt.s32.totalorder %s1244_s19, %s1244_s19 }
  0x2c   :  { %p1251_p8 = por %p1250_p7, %p1249_p6 }
  0x2e   :  { %p1252_p9 = pnand %p1251_p8, %p1245_p5 }
  0x30   :  { %1255 = shalt.err (!%p1252_p9)
}
  0x31   :  { %41 = dma.hbm_to_vmem [thread:$0]  %s1473_s2, 128, %s39_s29, [#allocation5]  }
  0x32   :  { %1256 = dma.done.wait [#allocation3], 32  }
  0x33   :  { %1257 = vsyncadd [#allocation3], 4294967264 }
  0x34   :  { %1258 = dma.done.wait [#allocation5], 1152  }
  0x35   :  { %1259 = vsyncadd [#allocation5], 4294966144  ;;  %v61_v0 = vlaneseq  ;;  %v1265_v2 = vmov 0.0|0.0   ;;  %v51_v6 = vld [vmem:[#allocation2] sm:$0x3]  ;;  %v52_v8 = vld [vmem:[#allocation4] sm:$0xff] }
  0x36   :  { %1050 = vmatprep.subr.bf16.mxu0 %v1265_v2  ;;  %1062 = vmatprep.subr.bf16.mxu1 %v1265_v2  ;;  %v1333_v7 = vld [vmem:[#allocation6] sm:$0x1f]  ;;  %v53_v11 = vld [vmem:[#allocation4 + $0x8] sm:$0xff]  ;;  %v54_v12 = vld [vmem:[#allocation4 + $0x10] sm:$0xff]  ;;  %s1266_s2 = smov 32   ;;  %vm1267_vm0 = vmmov 0  }
  0x37   :  { %v1326_v1 = vshrl.u32 %v61_v0, 7  ;;  %v55_v13 = vld [vmem:[#allocation4 + $0x18] sm:$0xff]  ;;  %v1336_v14 = vpack.c.bf16 %v53_v11, %v52_v8  ;;  %v56_v17 = vld [vmem:[#allocation4 + $0x20] sm:$0xff]  ;;  %v57_v18 = vld [vmem:[#allocation4 + $0x28] sm:$0xff]  ;;  %v1268_v19 = vmov 0.0   ;;  %vm96_vm1 = vcmask 261120  }
  0x38   :  { %v1340_v16 = vpack.c.bf16 %v55_v13, %v54_v12  ;;  %914 = vmatprep.mubr.msk.f32.mxu0 %vm1267_vm0, %v1268_v19  ;;  %933 = vmatprep.mubr.msk.f32.mxu1 %vm1267_vm0, %v1268_v19  ;;  %v1351_v20 = vpack.c.bf16 %v57_v18, %v56_v17  ;;  %v58_v21 = vld [vmem:[#allocation4 + $0x30] sm:$0xff]  ;;  %v59_v22 = vld [vmem:[#allocation4 + $0x38] sm:$0xff]  ;;  %vm104_vm2 = vcmask 1041409   ;;  %vm108_vm3 = vcmask 523264   ;;  %s1269_s21 = smov 96  }
  0x39   :  { %v70_v3 = vsub.s32 1, %v1326_v1  ;;  %v89_v4 = vsub.s32 2, %v1326_v1  ;;  %v63_v5 = vsub.s32 0, %v1326_v1  ;;  %1052 = vmatpush3.bf16.msra.mxu0 %v1336_v14  ;;  %1064 = vmatpush3.bf16.msra.mxu1 %v1336_v14  ;;  %v1357_v23 = vpack.c.bf16 %v59_v22, %v58_v21 }
  0x3a   :  { %1053 = vmatprep.subr.bf16.mxu0 %v1265_v2  ;;  %1065 = vmatprep.subr.bf16.mxu1 %v1265_v2  ;;  %vm801_vm4 = vcmask 254976   ;;  %vm810_vm5 = vcmask 1024  }
  0x3b   :  { %v71_v9 = vrot.slane %v51_v6, %v70_v3  ;;  %v90_v10 = vrot.slane %v1333_v7, %v89_v4  ;;  %v64_v15 = vrot.slane %v51_v6, %v63_v5  ;;  %v78_v24 = vrot.slane %v1333_v7, %v63_v5 }
  0x3c   :  { %v84_v25 = vrot.slane %v1333_v7, %v70_v3 }
  0x3d   :  { %73 = vbcast.lane.b32.xlu0 %v71_v9, 256  ;;  %93 = vrot.lane.b32.xlu1 %v90_v10, %s1266_s2 }
  0x3e   :  { %1055 = vmatpush3.bf16.msra.mxu0 %v1340_v16  ;;  %1067 = vmatpush3.bf16.msra.mxu1 %v1340_v16 }
  0x3f   :  { %1056 = vmatprep.subr.bf16.mxu0 %v1265_v2  ;;  %1068 = vmatprep.subr.bf16.mxu1 %v1265_v2 }
  0x41   :  { %66 = vbcast.lane.b32.xlu0 %v64_v15, 256  ;;  %783 = vrot.lane.b32.xlu1 %v90_v10, %s1266_s2 }
  0x42   :  { %1058 = vmatpush3.bf16.msra.mxu0 %v1351_v20  ;;  %1070 = vmatpush3.bf16.msra.mxu1 %v1351_v20 }
  0x43   :  { %1059 = vmatprep.subr.bf16.mxu0 %v1265_v2  ;;  %1071 = vmatprep.subr.bf16.mxu1 %v1265_v2 }
  0x46   :  { %1061 = vmatpush3.bf16.msra.mxu0 %v1357_v23  ;;  %1073 = vmatpush3.bf16.msra.mxu1 %v1357_v23 }
  0x47   :  { %1074 = vmatprep.subr.bf16.mxu0 %v1265_v2  ;;  %1086 = vmatprep.subr.bf16.mxu1 %v1265_v2 }
  0xaf   :  { %v74_v26 = vpop.permute.xlu0 %73  ;;  %v94_v28 = vpop.permute.xlu1 %93 }
  0xb0   :  { %v80_v27 = vmul.f32 %v78_v24, %v74_v26 }
  0xb2   :  { %v86_v29 = vadd.f32 %v84_v25, %v80_v27 }
  0xb3   :  { %v67_v30 = vpop.permute.xlu0 %66 }
  0xb4   :  { %1156 = vtanh.f32 %v86_v29  ;;  %v1369_v31 = vsel %vm96_vm1, %v86_v29, %v94_v28  ;;  %v79_v32 = vmul.f32 %v78_v24, %v67_v30 }
  0xb6   :  { %v85_v33 = vadd.f32 %v84_v25, %v79_v32 }
  0xb8   :  { %v1372_v34 = vsel %vm96_vm1, %v85_v33, %v94_v28  ;;  %1158 = vtanh.f32 %v85_v33 }
  0xbe   :  { %v1157_v35 = vpop.eup %1156 }
  0xbf   :  { %v103_v36 = vrot.slane %v1157_v35, 7 }
  0xc2   :  { %v1159_v37 = vpop.eup %1158 }
  0xc3   :  { %v105_v38 = vsel %vm104_vm2, %v103_v36, %v1159_v37 }
  0xc4   :  { %v107_v39 = vsel %vm96_vm1, %v105_v38, 0.0 }
  0xc5   :  { %915 = vmatmul.mubr.msk.f32.vlgmr.msra.gmra.mrb[0].mxu0 %vm108_vm3, %v107_v39 }
  0xc6   :  { %1076 = vmatpush3.bf16.msra.mxu0 %v1336_v14  ;;  %952 = vmatprep.mubr.msk.f32.mxu0 %vm1267_vm0, %v1268_v19 }
  0xc7   :  { %1077 = vmatprep.subr.bf16.mxu0 %v1265_v2 }
  0xca   :  { %1079 = vmatpush3.bf16.msra.mxu0 %v1340_v16 }
  0xcb   :  { %1080 = vmatprep.subr.bf16.mxu0 %v1265_v2 }
  0xce   :  { %1082 = vmatpush3.bf16.msra.mxu0 %v1351_v20 }
  0xcf   :  { %1083 = vmatprep.subr.bf16.mxu0 %v1265_v2 }
  0xd2   :  { %1085 = vmatpush3.bf16.msra.mxu0 %v1357_v23 }
  0xd3   :  { %1098 = vmatprep.subr.bf16.mxu0 %v1265_v2 }
 0x198   :  { %v178_v40 = vpop.f32.mrb[0].mxu0 }
 0x199   :  { %v183_v41 = vrot.slane %v178_v40, 7  ;;  %v916_v42 = vpop.f32.mrb[1].mxu0  ;;  %v187_v44 = vadd.f32 %v178_v40, %v1369_v31 }
 0x19b   :  { %v186_v43 = vadd.f32 %v183_v41, %v1372_v34 }
 0x19d   :  { %1160 = vtanh.f32 %v186_v43 }
 0x19e   :  { %1162 = vtanh.f32 %v187_v44 }
 0x1a7   :  { %v1161_v45 = vpop.eup %1160 }
 0x1a8   :  { %v192_v46 = vrot.slane %v1161_v45, 1  ;;  %v1163_v47 = vpop.eup %1162 }
 0x1aa   :  { %v193_v48 = vsel %vm104_vm2, %v1163_v47, %v192_v46 }
 0x1ab   :  { %934 = vmatmul.mubr.msk.f32.vlgmr.msra.gmra.mrb[0].mxu1 %vm108_vm3, %v193_v48 }
 0x1ac   :  { %1088 = vmatpush3.bf16.msra.mxu1 %v1336_v14  ;;  %971 = vmatprep.mubr.msk.f32.mxu1 %vm1267_vm0, %v1268_v19 }
 0x1ad   :  { %1089 = vmatprep.subr.bf16.mxu1 %v1265_v2 }
 0x1b0   :  { %1091 = vmatpush3.bf16.msra.mxu1 %v1340_v16 }
 0x1b1   :  { %1092 = vmatprep.subr.bf16.mxu1 %v1265_v2 }
 0x1b4   :  { %1094 = vmatpush3.bf16.msra.mxu1 %v1351_v20 }
 0x1b5   :  { %1095 = vmatprep.subr.bf16.mxu1 %v1265_v2 }
 0x1b8   :  { %1097 = vmatpush3.bf16.msra.mxu1 %v1357_v23 }
 0x1b9   :  { %1110 = vmatprep.subr.bf16.mxu1 %v1265_v2 }
 0x27e   :  { %v262_v49 = vpop.f32.mrb[0].mxu1 }
 0x27f   :  { %v267_v50 = vrot.slane %v262_v49, 6  ;;  %v268_v51 = vrot.slane %v262_v49, 7  ;;  %v935_v52 = vpop.f32.mrb[1].mxu1 }
 0x281   :  { %v271_v53 = vadd.f32 %v267_v50, %v1372_v34  ;;  %v272_v54 = vadd.f32 %v268_v51, %v1369_v31 }
 0x283   :  { %1164 = vtanh.f32 %v271_v53 }
 0x284   :  { %1166 = vtanh.f32 %v272_v54 }
 0x28d   :  { %v1165_v55 = vpop.eup %1164 }
 0x28e   :  { %v1167_v56 = vpop.eup %1166  ;;  %v277_v57 = vrot.slane %v1165_v55, 2 }
 0x28f   :  { %v278_v58 = vrot.slane %v1167_v56, 1 }
 0x291   :  { %v279_v59 = vsel %vm104_vm2, %v278_v58, %v277_v57  ;;  %v784_v57 = vpop.permute.xlu1 %783 }
 0x292   :  { %953 = vmatmul.mubr.msk.f32.vlgmr.msra.gmra.mrb[2].mxu0 %vm108_vm3, %v279_v59 }
 0x293   :  { %1100 = vmatpush3.bf16.msra.mxu0 %v1336_v14  ;;  %990 = vmatprep.mubr.msk.f32.mxu0 %vm1267_vm0, %v1268_v19 }
 0x294   :  { %1101 = vmatprep.subr.bf16.mxu0 %v1265_v2 }
 0x297   :  { %1103 = vmatpush3.bf16.msra.mxu0 %v1340_v16 }
 0x298   :  { %1104 = vmatprep.subr.bf16.mxu0 %v1265_v2 }
 0x29b   :  { %1106 = vmatpush3.bf16.msra.mxu0 %v1351_v20 }
 0x29c   :  { %1107 = vmatprep.subr.bf16.mxu0 %v1265_v2 }
 0x29f   :  { %1109 = vmatpush3.bf16.msra.mxu0 %v1357_v23 }
 0x2a0   :  { %1122 = vmatprep.subr.bf16.mxu0 %v1265_v2 }
 0x365   :  { %v348_v60 = vpop.f32.mrb[2].mxu0 }
 0x366   :  { %v353_v61 = vrot.slane %v348_v60, 5  ;;  %v354_v62 = vrot.slane %v348_v60, 6  ;;  %v954_v63 = vpop.f32.mrb[3].mxu0 }
 0x368   :  { %v357_v0 = vadd.f32 %v353_v61, %v1372_v34  ;;  %v358_v3 = vadd.f32 %v354_v62, %v1369_v31 }
 0x36a   :  { %1168 = vtanh.f32 %v357_v0  ;;  %v807_v0 = vsub.s32 4, %v1326_v1 }
 0x36b   :  { %1170 = vtanh.f32 %v358_v3 }
 0x36c   :  { %v808_v3 = vrot.slane %v1333_v7, %v807_v0 }
 0x374   :  { %v1169_v4 = vpop.eup %1168 }
 0x375   :  { %v1171_v5 = vpop.eup %1170  ;;  %v363_v6 = vrot.slane %v1169_v4, 3 }
 0x376   :  { %v364_v8 = vrot.slane %v1171_v5, 2 }
 0x378   :  { %v365_v9 = vsel %vm104_vm2, %v364_v8, %v363_v6 }
 0x379   :  { %972 = vmatmul.mubr.msk.f32.vlgmr.msra.gmra.mrb[2].mxu1 %vm108_vm3, %v365_v9 }
 0x37a   :  { %1112 = vmatpush3.bf16.msra.mxu1 %v1336_v14  ;;  %1009 = vmatprep.mubr.msk.f32.mxu1 %vm1267_vm0, %v1268_v19 }
 0x37b   :  { %1113 = vmatprep.subr.bf16.mxu1 %v1265_v2 }
 0x37e   :  { %1115 = vmatpush3.bf16.msra.mxu1 %v1340_v16 }
 0x37f   :  { %1116 = vmatprep.subr.bf16.mxu1 %v1265_v2 }
 0x382   :  { %1118 = vmatpush3.bf16.msra.mxu1 %v1351_v20 }
 0x383   :  { %1119 = vmatprep.subr.bf16.mxu1 %v1265_v2 }
 0x386   :  { %1121 = vmatpush3.bf16.msra.mxu1 %v1357_v23 }
 0x387   :  { %1134 = vmatprep.subr.bf16.mxu1 %v1265_v2 }
 0x44c   :  { %v434_v10 = vpop.f32.mrb[2].mxu1 }
 0x44d   :  { %v439_v11 = vrot.slane %v434_v10, 4  ;;  %v440_v12 = vrot.slane %v434_v10, 5  ;;  %v973_v13 = vpop.f32.mrb[3].mxu1 }
 0x44f   :  { %v443_v15 = vadd.f32 %v439_v11, %v1372_v34  ;;  %v444_v17 = vadd.f32 %v440_v12, %v1369_v31 }
 0x451   :  { %1172 = vtanh.f32 %v443_v15 }
 0x452   :  { %1174 = vtanh.f32 %v444_v17 }
 0x45b   :  { %v1173_v18 = vpop.eup %1172 }
 0x45c   :  { %v1175_v21 = vpop.eup %1174  ;;  %v449_v22 = vrot.slane %v1173_v18, 4 }
 0x45d   :  { %v450_v24 = vrot.slane %v1175_v21, 3 }
 0x45f   :  { %v451_v25 = vsel %vm104_vm2, %v450_v24, %v449_v22 }
 0x460   :  { %991 = vmatmul.mubr.msk.f32.vlgmr.msra.gmra.mrb[4].mxu0 %vm108_vm3, %v451_v25 }
 0x461   :  { %1124 = vmatpush3.bf16.msra.mxu0 %v1336_v14  ;;  %1028 = vmatprep.mubr.msk.f32.mxu0 %vm1267_vm0, %v1268_v19 }
 0x462   :  { %1125 = vmatprep.subr.bf16.mxu0 %v1265_v2 }
 0x465   :  { %1127 = vmatpush3.bf16.msra.mxu0 %v1340_v16 }
 0x466   :  { %1128 = vmatprep.subr.bf16.mxu0 %v1265_v2 }
 0x469   :  { %1130 = vmatpush3.bf16.msra.mxu0 %v1351_v20 }
 0x46a   :  { %1131 = vmatprep.subr.bf16.mxu0 %v1265_v2 }
 0x46d   :  { %1133 = vmatpush3.bf16.msra.mxu0 %v1357_v23 }
 0x533   :  { %v520_v26 = vpop.f32.mrb[4].mxu0 }
 0x534   :  { %v525_v27 = vrot.slane %v520_v26, 3  ;;  %v526_v28 = vrot.slane %v520_v26, 4  ;;  %v992_v29 = vpop.f32.mrb[5].mxu0 }
 0x536   :  { %v529_v30 = vadd.f32 %v525_v27, %v1372_v34  ;;  %v530_v32 = vadd.f32 %v526_v28, %v1369_v31 }
 0x538   :  { %1176 = vtanh.f32 %v529_v30 }
 0x539   :  { %1178 = vtanh.f32 %v530_v32 }
 0x542   :  { %v1177_v33 = vpop.eup %1176 }
 0x543   :  { %v1179_v35 = vpop.eup %1178  ;;  %v535_v36 = vrot.slane %v1177_v33, 5 }
 0x544   :  { %v536_v37 = vrot.slane %v1179_v35, 4 }
 0x546   :  { %v537_v38 = vsel %vm104_vm2, %v536_v37, %v535_v36 }
 0x547   :  { %1010 = vmatmul.mubr.msk.f32.vlgmr.msra.gmra.mrb[4].mxu1 %vm108_vm3, %v537_v38 }
 0x548   :  { %1136 = vmatpush3.bf16.msra.mxu1 %v1336_v14  ;;  %1047 = vmatprep.mubr.msk.f32.mxu1 %vm1267_vm0, %v1268_v19 }
 0x549   :  { %1137 = vmatprep.subr.bf16.mxu1 %v1265_v2 }
 0x54c   :  { %1139 = vmatpush3.bf16.msra.mxu1 %v1340_v16 }
 0x54d   :  { %1140 = vmatprep.subr.bf16.mxu1 %v1265_v2 }
 0x550   :  { %1142 = vmatpush3.bf16.msra.mxu1 %v1351_v20 }
 0x551   :  { %1143 = vmatprep.subr.bf16.mxu1 %v1265_v2  ;;  %v790_v2 = vsub.s32 3, %v1326_v1 }
 0x554   :  { %1145 = vmatpush3.bf16.msra.mxu1 %v1357_v23  ;;  %v791_v23 = vrot.slane %v1333_v7, %v790_v2 }
 0x556   :  { %793 = vrot.lane.b32.xlu0 %v791_v23, %s1266_s2 }
 0x5c8   :  { %v794_v61 = vpop.permute.xlu0 %793 }
 0x61a   :  { %v606_v39 = vpop.f32.mrb[4].mxu1 }
 0x61b   :  { %v611_v40 = vrot.slane %v606_v39, 2  ;;  %v612_v41 = vrot.slane %v606_v39, 3  ;;  %v1011_v42 = vpop.f32.mrb[5].mxu1 }
 0x61d   :  { %v615_v14 = vadd.f32 %v611_v40, %v1372_v34  ;;  %v616_v19 = vadd.f32 %v612_v41, %v1369_v31 }
 0x61f   :  { %1180 = vtanh.f32 %v615_v14 }
 0x620   :  { %1182 = vtanh.f32 %v616_v19 }
 0x629   :  { %v1181_v43 = vpop.eup %1180 }
 0x62a   :  { %v1183_v16 = vpop.eup %1182  ;;  %v621_v44 = vrot.slane %v1181_v43, 6 }
 0x62b   :  { %v622_v45 = vrot.slane %v1183_v16, 5 }
 0x62d   :  { %v623_v20 = vsel %vm104_vm2, %v622_v45, %v621_v44 }
 0x62e   :  { %1029 = vmatmul.mubr.msk.f32.vlgmr.msra.gmra.mrb[6].mxu0 %vm108_vm3, %v623_v20 }
 0x701   :  { %v692_v46 = vpop.f32.mrb[6].mxu0 }
 0x702   :  { %v697_v47 = vrot.slane %v692_v46, 1  ;;  %v698_v48 = vrot.slane %v692_v46, 2  ;;  %v1030_v49 = vpop.f32.mrb[7].mxu0 }
 0x704   :  { %v701_v50 = vadd.f32 %v697_v47, %v1372_v34  ;;  %v702_v51 = vadd.f32 %v698_v48, %v1369_v31 }
 0x706   :  { %1184 = vtanh.f32 %v701_v50 }
 0x707   :  { %1186 = vtanh.f32 %v702_v51 }
 0x710   :  { %v1185_v52 = vpop.eup %1184 }
 0x711   :  { %v1187_v53 = vpop.eup %1186  ;;  %v707_v54 = vrot.slane %v1185_v52, 7 }
 0x712   :  { %v708_v55 = vrot.slane %v1187_v53, 6 }
 0x714   :  { %v709_v56 = vsel %vm104_vm2, %v708_v55, %v707_v54 }
 0x715   :  { %1048 = vmatmul.mubr.msk.f32.vlgmr.msra.gmra.mrb[6].mxu1 %vm108_vm3, %v709_v56 }
 0x7e8   :  { %v778_v58 = vpop.f32.mrb[6].mxu1 }
 0x7e9   :  { %v786_v59 = vadd.f32 %v784_v57, %v778_v58  ;;  %v1049_v60 = vpop.f32.mrb[7].mxu1 }
 0x7eb   :  { %1188 = vtanh.f32 %v786_v59 }
 0x7f5   :  { %v1189_v62 = vpop.eup %1188 }
 0x7f6   :  { %v796_v34 = vmul.f32 %v1189_v62, %v794_v61 }
 0x7f8   :  { %798 = vrot.lane.b32.xlu1 %v796_v34, %s1269_s21 }
 0x86a   :  { %v799_v31 = vpop.permute.xlu1 %798 }
 0x86b   :  { %v802_v63 = vsel %vm801_vm4, %v799_v31, 0.0 }
 0x86c   :  { %803 = vadd.xlane.f32.xlu0 %v802_v63 }
 0x8f9   :  { %v804_v4 = vpop.xlane.xlu0 %803 }
 0x8fa   :  { %v809_v5 = vadd.f32 %v808_v3, %v804_v4 }
 0x8fc   :  { %811 = vst.msk [vmem:[%s1474_s3] sm:$0x3] %vm810_vm5, %v809_v5 }
 0x8fd   :  { %816 = vsyncpa [#allocation3], 1 }
 0x8fe   :  { %817 = vsyncpa [#allocation5], 1 }

</bundles_post_ra>
